<compile_context>
chip_gen: v7x
topology: tpu7x:2x2x1
jax: 0.10.0
libtpu: 0.0.40
codegen_flags: <defaults>
</compile_context>

<pallas_src>
import functools

import jax
import jax.numpy as jnp
from jax.experimental import pallas as pl
from jax.experimental.pallas import tpu as pltpu


# ---------------------------------------------------------------------------
# Tiny one-time probe: pin down pltpu.roll's shift convention so the im2col
# lane shifts are correct regardless of the rotate direction convention.
# ---------------------------------------------------------------------------
def _roll_probe_kernel(x_ref, o_ref):
    o_ref[...] = pltpu.roll(x_ref[...], 1, axis=1)


@functools.lru_cache(maxsize=None)
def _roll_matches_numpy() -> bool:
    """True iff pltpu.roll(x, k, axis) == jnp.roll(x, k, axis)."""
    n = 256
    x = jnp.broadcast_to(jnp.arange(n, dtype=jnp.float32), (8, n))
    y = pl.pallas_call(
        _roll_probe_kernel,
        out_shape=jax.ShapeDtypeStruct((8, n), jnp.float32),
    )(x)
    # numpy convention -> y[0,0] == n-1 ; opposite convention -> y[0,0] == 1
    return float(y[0, 0]) != 1.0


# ---------------------------------------------------------------------------
# Fused SEBasicBlock kernel (one image per grid step)
# ---------------------------------------------------------------------------
def _se_basic_block_kernel(x_ref, masks_ref, w1_ref, b1_ref, w2_ref, b2_ref,
                           fc1_ref, fc2_ref, o_ref, cols_ref,
                           *, H, W, roll_np):
    # x_ref    : (1, C, H*W)  f32   one image; channels=sublanes, pixels=lanes
    # masks_ref: (8, 1, H*W)  f32   border-validity masks for the 8 shifted taps
    # w1_ref   : (C, 9*C)     bf16  conv1 weight, BN1 scale folded in
    # b1_ref   : (C, 1)       f32   folded BN1 bias
    # w2_ref   : (C, 9*C)     bf16  conv2 weight, BN2 scale folded in
    # b2_ref   : (C, 1)       f32   folded BN2 bias
    # fc1_ref  : (C, Cr)      f32   SE fc1 weight (torch weight transposed)
    # fc2_ref  : (C, Cr)      f32   SE fc2 weight (torch layout)
    # o_ref    : (1, C, H*W)  f32
    # cols_ref : (9*C, H*W)   bf16  scratch im2col slab, reused by both convs
    HW = H * W
    C = x_ref.shape[1]

    x = x_ref[0]                                   # (C, HW) f32 (also residual)

    # Tap (kh, kw) of a padding=1 3x3 conv reads flat pixel p + s with
    # s = (kh-1)*W + (kw-1); out-of-image reads are zeroed by the mask.
    # Mask order below must match the wrapper's construction (row-major taps,
    # center tap skipped).
    taps = []
    mi = 0
    for kh in range(3):
        for kw in range(3):
            s = (kh - 1) * W + (kw - 1)
            if s == 0:
                taps.append((None, None))
            else:
                shift = (-s) % HW if roll_np else s % HW
                taps.append((shift, mi))
                mi += 1

    def im2col_into_scratch(src):
        # src (C, HW) f32 -> cols_ref[(kh*3+kw)*C + c, p] = src[c, p+s] (masked)
        for t, (shift, m) in enumerate(taps):
            if shift is None:
                blk = src
            else:
                blk = pltpu.roll(src, shift, axis=1) * masks_ref[m]
            cols_ref[t * C:(t + 1) * C, :] = blk.astype(jnp.bfloat16)

    # ---- conv1 (single MXU matmul, K = 9*C) + folded BN1 + ReLU ------------
    im2col_into_scratch(x)
    out1 = jnp.dot(w1_ref[...], cols_ref[...],
                   preferred_element_type=jnp.float32)        # (C, HW) f32
    out1 = jnp.maximum(out1 + b1_ref[...], 0.0)

    # ---- conv2 (single MXU matmul) + folded BN2 ----------------------------
    im2col_into_scratch(out1)
    out2 = jnp.dot(w2_ref[...], cols_ref[...],
                   preferred_element_type=jnp.float32)        # (C, HW) f32
    out2 = out2 + b2_ref[...]

    # ---- SE: global avg pool -> fc1 -> ReLU -> fc2 -> sigmoid (VPU / EUP) --
    y = jnp.mean(out2, axis=1, keepdims=True)                            # (C, 1)
    h = jnp.maximum(jnp.sum(fc1_ref[...] * y, axis=0, keepdims=True), 0.0)   # (1, Cr)
    gate = jax.nn.sigmoid(jnp.sum(fc2_ref[...] * h, axis=1, keepdims=True))  # (C, 1)

    # ---- gate * out2 + residual -> ReLU -> lane-dense store ----------------
    out = jnp.maximum(out2 * gate + x, 0.0)
    o_ref[...] = out[None].astype(o_ref.dtype)


def se_basic_block(x_nchw, w1_oihw, bn1_params, w2_oihw, bn2_params,
                   fc1_w, fc2_w, eps=1e-5):
    """Forward pass of SEBasicBlock (stride=1, downsample=None, eval-mode BN).

    x_nchw  : (B, C, H, W) float32
    w*_oihw : (C, C, 3, 3) conv weights (PyTorch OIHW layout, bias=False)
    bn*     : (gamma, beta, running_mean, running_var), each (C,)
    fc1_w   : (Cr, C)  torch weight of se.fc[0]   (Cr = C // reduction)
    fc2_w   : (C, Cr)  torch weight of se.fc[2]
    """
    B, C, H, W = x_nchw.shape
    Cout, Cin, KH, KW = w1_oihw.shape
    assert (Cout, Cin, KH, KW) == (C, C, 3, 3), \
        "downsample=None => inplanes == outplanes, 3x3 kernels, stride 1"
    Cr = fc1_w.shape[0]
    HW = H * W

    # NCHW -> (B, C, H*W): a pure reshape (no transpose, no HBM round trip).
    x = x_nchw.reshape(B, C, HW).astype(jnp.float32)

    # Border-validity masks for the 8 shifted taps (built once with XLA).
    # Order = row-major (kh, kw), center tap skipped -- must match the kernel.
    rows = jnp.arange(HW, dtype=jnp.int32) // W
    cols = jnp.arange(HW, dtype=jnp.int32) % W
    mask_list = []
    for kh in range(3):
        for kw in range(3):
            dh, dw = kh - 1, kw - 1
            if dh == 0 and dw == 0:
                continue
            valid = ((rows + dh >= 0) & (rows + dh < H) &
                     (cols + dw >= 0) & (cols + dw < W))
            mask_list.append(valid.astype(jnp.float32).reshape(1, HW))
    masks = jnp.stack(mask_list, axis=0)                      # (8, 1, HW) f32

    def fold(w_oihw, bn):
        g, b, m, v = bn
        scale = (g / jnp.sqrt(v + eps)).astype(jnp.float32)
        bias = (b - m * scale).reshape(-1, 1).astype(jnp.float32)
        # OIHW -> (O, KH, KW, I) -> (O, 9*I); K index = (kh*3+kw)*Cin + cin.
        wf = jnp.transpose(w_oihw, (0, 2, 3, 1)).reshape(w_oihw.shape[0], -1)
        wf = (wf * scale[:, None]).astype(jnp.bfloat16)       # BN scale folded
        return wf, bias

    w1f, b1 = fold(w1_oihw, bn1_params)
    w2f, b2 = fold(w2_oihw, bn2_params)
    fc1_t = jnp.transpose(fc1_w).astype(jnp.float32)          # (C, Cr)
    fc2 = fc2_w.astype(jnp.float32)                           # (C, Cr)

    kernel = functools.partial(_se_basic_block_kernel, H=H, W=W,
                               roll_np=_roll_matches_numpy())

    def full(arr):
        return pl.BlockSpec(arr.shape, lambda b: (0,) * arr.ndim)

    out = pl.pallas_call(
        kernel,
        out_shape=jax.ShapeDtypeStruct((B, C, HW), jnp.float32),
        grid=(B,),
        in_specs=[
            pl.BlockSpec((1, C, HW), lambda b: (b, 0, 0)),
            full(masks),
            full(w1f), full(b1),
            full(w2f), full(b2),
            full(fc1_t), full(fc2),
        ],
        out_specs=pl.BlockSpec((1, C, HW), lambda b: (b, 0, 0)),
        scratch_shapes=[pltpu.VMEM((9 * C, HW), jnp.bfloat16)],
        compiler_params=pltpu.CompilerParams(
            dimension_semantics=("parallel",)),
    )(x, masks, w1f, b1, w2f, b2, fc1_t, fc2)

    return out.reshape(B, C, H, W)


# ---------------------------------------------------------------------------
# Pure-JAX (XLA) reference mirroring the PyTorch forward (eval-mode BN).
# conv_dtype=bfloat16 mirrors the kernel's MXU operand quantization (f32 accum).
# ---------------------------------------------------------------------------
def _reference(x, w1, bn1, w2, bn2, fc1_w, fc2_w, eps=1e-5,
               conv_dtype=jnp.float32):
    def conv(a, w):
        return jax.lax.conv_general_dilated(
            a.astype(conv_dtype), w.astype(conv_dtype), (1, 1),
            ((1, 1), (1, 1)),
            dimension_numbers=("NCHW", "OIHW", "NCHW"),
            preferred_element_type=jnp.float32)

    def bn(a, p):
        g, b, m, v = (t[None, :, None, None] for t in p)
        return (a - m) / jnp.sqrt(v + eps) * g + b

    out = jax.nn.relu(bn(conv(x, w1), bn1))
    out = bn(conv(out, w2), bn2)
    y = out.mean(axis=(2, 3))
    y = jax.nn.relu(y @ fc1_w.T)
    y = jax.nn.sigmoid(y @ fc2_w.T)
    out = out * y[:, :, None, None]
    return jax.nn.relu(out + x)


if __name__ == "__main__":
    B, C, H, W = 2, 32, 16, 16        # inplanes == outplanes, stride=1, downsample=None
    reduction = 16
    Cr = C // reduction

    key = jax.random.PRNGKey(0)
    k = jax.random.split(key, 5)
    x = jax.random.normal(k[0], (B, C, H, W), jnp.float32)

    # Deterministic parameter init (PyTorch shapes).
    w1 = jax.random.normal(k[1], (C, C, 3, 3), jnp.float32) * 0.1   # conv1.weight
    w2 = jax.random.normal(k[2], (C, C, 3, 3), jnp.float32) * 0.1   # conv2.weight
    fc1_w = jax.random.normal(k[3], (Cr, C), jnp.float32) * 0.2     # se.fc[0].weight
    fc2_w = jax.random.normal(k[4], (C, Cr), jnp.float32) * 0.2     # se.fc[2].weight

    # BatchNorm2d default init (eval mode): gamma=1, beta=0, mean=0, var=1.
    bn1 = (jnp.ones((C,)), jnp.zeros((C,)), jnp.zeros((C,)), jnp.ones((C,)))
    bn2 = (jnp.ones((C,)), jnp.zeros((C,)), jnp.zeros((C,)), jnp.ones((C,)))

    out = jax.block_until_ready(se_basic_block(x, w1, bn1, w2, bn2, fc1_w, fc2_w))
    assert out.shape == (B, C, H, W)

    # Tight check against a reference with the same bf16 MXU-operand quantization.
    ref_bf16 = jax.block_until_ready(
        _reference(x, w1, bn1, w2, bn2, fc1_w, fc2_w, conv_dtype=jnp.bfloat16))
    assert jnp.allclose(out, ref_bf16, rtol=1e-2, atol=1e-2), \
        float(jnp.max(jnp.abs(out - ref_bf16)))

    # Loose sanity check against the full-f32 reference (bounds bf16 quantization).
    ref_f32 = jax.block_until_ready(
        _reference(x, w1, bn1, w2, bn2, fc1_w, fc2_w, conv_dtype=jnp.float32))
    assert jnp.allclose(out, ref_f32, rtol=1e-1, atol=1e-1), \
        float(jnp.max(jnp.abs(out - ref_f32)))

    print("KERNEL_OK")
</pallas_src>

<mosaic_0001>
module attributes {stable_mosaic.version = 11 : i64} {
  func.func @_roll_probe_kernel(%arg0: memref<8x256xf32, #tpu.memory_space<vmem>>, %arg1: memref<8x256xf32, #tpu.memory_space<vmem>>) attributes {dimension_semantics = [], scalar_prefetch = 0 : i64, scratch_operands = 0 : i64, tpu.core_type = #tpu.core_type<tc>} {
    %c0 = arith.constant 0 : index
    %c0_0 = arith.constant 0 : index
    %0 = vector.load %arg0[%c0, %c0_0] : memref<8x256xf32, #tpu.memory_space<vmem>>, vector<8x256xf32>
    %c1_i32 = arith.constant 1 : i32
    %1 = tpu.dynamic_rotate %0 by %c1_i32 dim 1 : vector<8x256xf32>, i32 -> vector<8x256xf32>
    %c0_1 = arith.constant 0 : index
    %c0_2 = arith.constant 0 : index
    %2 = vector.load %arg1[%c0_1, %c0_2] : memref<8x256xf32, #tpu.memory_space<vmem>>, vector<8x256xf32>
    tpu.vector_store %arg1[%c0_1, %c0_2], %1 {strides = array<i32>} : memref<8x256xf32, #tpu.memory_space<vmem>>, vector<8x256xf32>,
    return
  }
}

</mosaic_0001>

<bundles_post_ra>
// kernel: tpu_custom_call.1
= control target key start
LH: loop header
LB: loop body
LE: loop exit
PB: predicated region body
PF: predicated region fallthrough
CT: control target
= control target key end

     0   :  { %6 = vsyncpa [#allocation3], 0  ;;  %s137_s0 = inlined_call_operand.hbm [shape: f32[8,256], index: 0, kind: input, shape index: {}]   ;;  %s138_s1 = inlined_call_operand.hbm [shape: f32[8,256], index: 1, kind: output, shape index: {}]  }
   0x1   :  { %7 = vsyncpa [#allocation4], 0  ;;  %s100_s6 = smov [#allocation2]   ;;  %s52_s10 = scalar_lea.hbm %s137_s0, 256 }
   0x2   :  { %s14_s7 = sshll.u32 %s100_s6, 4  ;;  %p53_p0 = scmp.ne.s32.totalorder %s137_s0, %s52_s10  ;;  %s15_s7 = int_to_ptr.vmem [resolvable:$true] %s14_s7 }
   0x3   :  { %p56_p1 = scmp.lt.u32.totalorder %s52_s10, %s137_s0 }
   0x5   :  { %p58_p2 = pnand %p56_p1, %p53_p0 }
   0x7   :  { %61 = shalt.err (!%p58_p2)
}
   0x8   :  { %s62_s15 = scalar_lea.vmem %s15_s7, 256  ;;  %p67_p4 = scmp.lt.s32.totalorder %s15_s7, %s15_s7 }
   0x9   :  { %p63_p3 = scmp.ne.s32.totalorder %s15_s7, %s62_s15  ;;  %p68_p5 = scmp.lt.s32.totalorder %s62_s15, %s62_s15 }
   0xb   :  { %p69_p6 = por %p68_p5, %p67_p4 }
   0xd   :  { %p70_p7 = pnand %p69_p6, %p63_p3 }
   0xf   :  { %73 = shalt.err (!%p70_p7)
}
  0x10   :  { %17 = dma.hbm_to_vmem [thread:$0]  %s137_s0, 256, %s15_s7, [#allocation3]  }
  0x11   :  { %96 = dma.done.wait [#allocation3], 256  }
  0x12   :  { %97 = vsyncadd [#allocation3], 4294967040  ;;  %v21_v0 = vld [vmem:[#allocation2] sm:$0xff]  ;;  %s101_s18 = smov 1   ;;  %v22_v1 = vld [vmem:[#allocation2 + $0x8] sm:$0xff]  ;;  %v27_v2 = vlaneseq  ;;  %s102_s19 = smov [#allocation5]  }
  0x13   :  { %23 = vrot.lane.b32.xlu0 %v21_v0, %s101_s18  ;;  %s40_s20 = sshll.u32 %s102_s19, 4  ;;  %s41_s20 = int_to_ptr.vmem [resolvable:$true] %s40_s20 }
  0x14   :  { %v28_v3 = vand.u32 127, %v27_v2  ;;  %s74_s0 = scalar_lea.vmem %s41_s20, 256  ;;  %p79_p9 = scmp.lt.s32.totalorder %s41_s20, %s41_s20 }
  0x15   :  { %p75_p8 = scmp.ne.s32.totalorder %s41_s20, %s74_s0  ;;  %p80_p10 = scmp.lt.s32.totalorder %s74_s0, %s74_s0 }
  0x16   :  { %vm29_vm0 = vcmp.lt.s32.totalorder %v28_v3, 1 }
  0x17   :  { %25 = vrot.lane.b32.xlu0 %v22_v1, %s101_s18  ;;  %p81_p11 = por %p80_p10, %p79_p9 }
  0x19   :  { %p82_p12 = pnand %p81_p11, %p75_p8 }
  0x85   :  { %v24_v4 = vpop.permute.xlu0 %23 }
  0x89   :  { %v26_v5 = vpop.permute.xlu0 %25 }
  0x8a   :  { %v30_v6 = vsel %vm29_vm0, %v24_v4, %v26_v5  ;;  %v31_v7 = vsel %vm29_vm0, %v26_v5, %v24_v4 }
  0x8b   :  { %32 = vst [vmem:[#allocation5] sm:$0xff] %v31_v7  ;;  %33 = vst [vmem:[#allocation5 + $0x8] sm:$0xff] %v30_v6 }
  0x8c   :  { %85 = shalt.err (!%p82_p12)
}
  0x8d   :  { %s86_s23 = scalar_lea.hbm %s138_s1, 256 }
  0x8e   :  { %p87_p13 = scmp.ne.s32.totalorder %s138_s1, %s86_s23  ;;  %p90_p0 = scmp.lt.u32.totalorder %s86_s23, %s138_s1 }
  0x90   :  { %p92_p1 = pnand %p90_p0, %p87_p13 }
  0x92   :  { %95 = shalt.err (!%p92_p1)
}
  0x93   :  { %43 = dma.vmem_to_hbm [thread:$0]  %s41_s20, 256, %s138_s1, [#allocation4]  }
  0x94   :  { %98 = dma.done.wait [#allocation4], 256  }
  0x95   :  { %99 = vsyncadd [#allocation4], 4294967040 }
  0x96   :  { %47 = vsyncpa [#allocation3], 1 }
  0x97   :  { %48 = vsyncpa [#allocation4], 1 }

</bundles_post_ra>
